<compile_context>
chip_gen: v5e
topology: v5e:2x2
jax: 0.10.0
libtpu: 0.0.40
codegen_flags: <defaults>
</compile_context>

<pallas_src>
import jax
import jax.numpy as jnp
import numpy as np
from jax.experimental import pallas as pl
from jax.experimental.pallas import tpu as pltpu


# ----------------------------- kernel ---------------------------------------


def mlp_moe_kernel(se_ref, od_ref,                 # scalar prefetch (SMEM), unused in body
                   x_ref,                          # (1, tile_n, Cp)
                   w1v_ref,                        # (1, Cp, Hp)  value half of fc1
                   b1v_ref,                        # (1, 1, Hp)
                   w1g_ref,                        # (1, Cp, Hp)  gate half of fc1
                   b1g_ref,                        # (1, 1, Hp)
                   w2_ref,                         # (1, Hp, Op)
                   b2_ref,                         # (1, 1, Op)
                   o_ref):                         # (1, tile_n, Op)
    del se_ref, od_ref                             # routing happens in the index_maps

    # bf16 (or f32 in debug mode) MXU operands; no-op cast if already matching.
    x = x_ref[0].astype(w1v_ref.dtype)             # (tile_n, Cp)

    # fc1 as two dots producing the value / gate halves directly -> no
    # in-kernel split of a fused output (which could materialize a copy).
    xv = jnp.dot(x, w1v_ref[0], preferred_element_type=jnp.float32) + b1v_ref[0]
    g = jnp.dot(x, w1g_ref[0], preferred_element_type=jnp.float32) + b1g_ref[0]

    # SwiGLU in f32 on VPU/EUP: silu(gate) * value.
    a = xv * (g * jax.nn.sigmoid(g))

    # TODO(synk): dropout omitted (drop_rate=0.0 / eval mode == identity).

    # fc2 — cast activation to the weight storage dtype so the MXU runs at
    # native rate; f32 accumulate.
    out = jnp.dot(a.astype(w2_ref.dtype), w2_ref[0],
                  preferred_element_type=jnp.float32) + b2_ref[0]
    o_ref[0] = out.astype(o_ref.dtype)


# ----------------------------- helpers ---------------------------------------


def _round_up(x, m):
    return ((x + m - 1) // m) * m


def _pad_to(a, axis, target):
    pad = target - a.shape[axis]
    if pad <= 0:
        return a
    widths = [(0, 0)] * a.ndim
    widths[axis] = (0, pad)
    return jnp.pad(a, widths)


def _vmem_limit_bytes():
    """Generation-aware VMEM limit: ~3/4 of physical, capped at 100 MiB."""
    cap = 64 * 1024 * 1024
    try:
        info = pltpu.get_tpu_info()
        cap = int(getattr(info, "vmem_capacity_bytes", cap))
    except Exception:
        pass
    return max(32 * 1024 * 1024, min((cap * 3) // 4, 100 * 1024 * 1024))


def _pick_tile_n(N, Cp, Hp, Op, w_itemsize, x_itemsize, vmem_budget, target=512):
    """Pick the token tile from a VMEM budget; MXU-M-aligned when large."""
    # Single-buffered weights + biases resident in VMEM.
    weight_bytes = (2 * Cp * Hp + Hp * Op) * w_itemsize + (2 * Hp + Op) * 4
    # Per-token: double-buffered x/out tiles + f32 intermediates (xv, g, a, out).
    per_token = 2 * (Cp + Op) * x_itemsize + (3 * Hp + Op) * 4
    avail = max(vmem_budget - weight_bytes, 0)
    cap = max(avail // max(per_token, 1), 16)
    t = min(target, int(cap), _round_up(N, 16))
    if t >= 256:
        t = (t // 256) * 256       # keep MXU M-dimension passes full
    else:
        t = max((t // 16) * 16, 16)  # multiple of 16 for bf16 sublane packing
    return int(t)


# ----------------------------- parameter prep --------------------------------


def prepare_moe_params(w1, b1, w2, b2, *, lane=128, mxu_dtype=jnp.bfloat16):
    """One-time parameter prep (do at init, NOT per forward call).

    w1: (E, C, 2*hidden) stored as y = x @ w1 + b1, last axis = [value | gate]
    b1: (E, 2*hidden);  w2: (E, hidden, out_dims);  b2: (E, out_dims)

    Splits fc1 into value/gate halves, zero-pads C / hidden / out_dims up to
    `lane` multiples (numerically a no-op: silu(0)=0 and padded w2 rows/cols
    are zero) and casts the matmul weights to `mxu_dtype` (default bf16;
    pass jnp.float32 for an exact debug path). Biases stay f32.

    TODO(synk): v7x fp8 weight option (per-expert scale folded into the f32
    bias/accumulate path) would halve weight bytes again; not implemented.
    """
    E, C, twoH = w1.shape
    hidden = twoH // 2
    out_dims = w2.shape[2]
    Cp = _round_up(C, lane)
    Hp = _round_up(hidden, lane)
    Op = _round_up(out_dims, lane)

    w1v = _pad_to(_pad_to(w1[:, :, :hidden], 1, Cp), 2, Hp)     # (E, Cp, Hp) value
    w1g = _pad_to(_pad_to(w1[:, :, hidden:], 1, Cp), 2, Hp)     # (E, Cp, Hp) gate
    b1v = _pad_to(b1[:, :hidden], 1, Hp).reshape(E, 1, Hp)
    b1g = _pad_to(b1[:, hidden:], 1, Hp).reshape(E, 1, Hp)
    w2p = _pad_to(_pad_to(w2, 1, Hp), 2, Op)                    # (E, Hp, Op)
    b2p = _pad_to(b2, 1, Op).reshape(E, 1, Op)

    if mxu_dtype is not None:
        w1v = w1v.astype(mxu_dtype)
        w1g = w1g.astype(mxu_dtype)
        w2p = w2p.astype(mxu_dtype)

    return dict(w1v=w1v, b1v=b1v.astype(jnp.float32),
                w1g=w1g, b1g=b1g.astype(jnp.float32),
                w2=w2p, b2=b2p.astype(jnp.float32),
                C=C, hidden=hidden, out_dims=out_dims, Cp=Cp, Hp=Hp, Op=Op)


# ----------------------------- wrapper ---------------------------------------


def mlp_moe(x, leat_t, params, *, max_t, tile_n=None, out_dtype=None):
    """x: (B, H, W, C); leat_t: (B,) int; params from prepare_moe_params."""
    B, Hs, Ws, C = x.shape
    N = Hs * Ws
    assert C == params["C"]
    Cp, Hp, Op = params["Cp"], params["Hp"], params["Op"]
    out_dims = params["out_dims"]
    compute_dtype = jnp.dtype(params["w1v"].dtype)
    out_dtype = x.dtype if out_dtype is None else out_dtype

    xf = x.reshape(B, N, C)
    # If the MXU operands are bf16, feed bf16 activations too: the matmuls
    # consume bf16 anyway, so a f32 x read only adds HBM bytes.
    if compute_dtype == jnp.dtype(jnp.bfloat16) and xf.dtype == jnp.float32:
        xf = xf.astype(jnp.bfloat16)
    if Cp != C:
        xf = _pad_to(xf, 2, Cp)     # zero channel padding (no-op math)

    vmem_limit = _vmem_limit_bytes()
    if tile_n is None:
        tile_n = _pick_tile_n(
            N, Cp, Hp, Op,
            w_itemsize=jnp.dtype(params["w1v"].dtype).itemsize,
            x_itemsize=jnp.dtype(xf.dtype).itemsize,
            vmem_budget=(vmem_limit * 4) // 5)
    # Pad the token axis up rather than shrinking the tile (padded rows are
    # computed then sliced off).
    Np = _round_up(N, tile_n)
    if Np != N:
        xf = _pad_to(xf, 1, Np)

    # Group batches by expert so consecutive grid steps reuse the resident
    # weight block (Pallas skips the weight DMA when the block index repeats).
    # The permutation lives only in the index_maps -> no data movement.
    eids = (leat_t % max_t).astype(jnp.int32)
    order = jnp.argsort(eids).astype(jnp.int32)        # batch permutation
    sorted_eids = eids[order]                          # monotone expert ids

    # HARD INVARIANT: batch (expert-sorted) axis OUTER, token-tile axis INNER,
    # and weight index_maps depend only on the batch axis. Any reorder reverts
    # weight DMA from O(#experts) to O(B * Np/tile_n).
    grid = (B, Np // tile_n)

    # Advisory cost hint for XLA scheduling around the custom call.
    x_item = jnp.dtype(xf.dtype).itemsize
    o_item = jnp.dtype(out_dtype).itemsize
    w_item = jnp.dtype(params["w1v"].dtype).itemsize
    flops = 2 * B * Np * (Cp * 2 * Hp + Hp * Op)
    bytes_accessed = (B * Np * Cp * x_item + B * Np * Op * o_item
                      + (params["w1v"].size + params["w1g"].size
                         + params["w2"].size) * w_item)
    cost = pl.CostEstimate(flops=flops, transcendentals=B * Np * Hp,
                           bytes_accessed=bytes_accessed)

    # Weight/bias blocks: index depends only on the (sorted) batch axis, so it
    # changes at most (#experts - 1) times across the whole grid -> single
    # buffering costs at most #experts exposed DMAs and halves weight VMEM.
    wspec = lambda shape: pl.BlockSpec(
        shape, lambda b, t, se, od: (se[b], 0, 0), pipeline_mode=pl.Buffered(1))

    # TODO(synk): for very large experts (weights >> VMEM budget) add an
    # innermost hidden-chunk grid axis ("arbitrary") with an f32 accumulator
    # scratch for the fc2 output, pre-chunking w1v/w1g/w2 at prep time.
    out = pl.pallas_call(
        mlp_moe_kernel,
        out_shape=jax.ShapeDtypeStruct((B, Np, Op), out_dtype),
        grid_spec=pltpu.PrefetchScalarGridSpec(
            num_scalar_prefetch=2,
            grid=grid,
            in_specs=[
                pl.BlockSpec((1, tile_n, Cp), lambda b, t, se, od: (od[b], t, 0)),
                wspec((1, Cp, Hp)),            # w1 value half
                wspec((1, 1, Hp)),             # b1 value half
                wspec((1, Cp, Hp)),            # w1 gate half
                wspec((1, 1, Hp)),             # b1 gate half
                wspec((1, Hp, Op)),            # w2
                wspec((1, 1, Op)),             # b2
            ],
            out_specs=pl.BlockSpec((1, tile_n, Op),
                                   lambda b, t, se, od: (od[b], t, 0)),
        ),
        compiler_params=pltpu.CompilerParams(
            # Both axes independent; on v7x megacore this lets the compiler
            # shard whichever axis balances better (token axis when B is tiny).
            dimension_semantics=("parallel", "parallel"),
            vmem_limit_bytes=vmem_limit),
        cost_estimate=cost,
    )(sorted_eids, order, xf,
      params["w1v"], params["b1v"], params["w1g"], params["b1g"],
      params["w2"], params["b2"])

    if Np != N or Op != out_dims:
        out = out[:, :N, :out_dims]
    return out.reshape(B, Hs, Ws, out_dims)


# ----------------------------- reference -------------------------------------


def reference(x, leat_t, w1, b1, w2, b2, max_t):
    """Pure-JAX reference replicating the PyTorch MlpMoe forward."""
    B, Hs, Ws, C = x.shape
    hidden = w2.shape[1]
    eids = leat_t % max_t

    def per_batch(xb, e):
        h = xb.reshape(-1, C) @ w1[e] + b1[e]
        xh, gate = h[:, :hidden], h[:, hidden:]
        a = jax.nn.silu(gate) * xh
        o = a @ w2[e] + b2[e]
        return o.reshape(Hs, Ws, -1)

    return jax.vmap(per_batch)(x, eids)


# ----------------------------- test ------------------------------------------


if __name__ == "__main__":
    key = jax.random.PRNGKey(0)
    B, Hs, Ws, C = 2, 8, 8, 32
    mlp_ratio = 2.0
    max_t = 3
    hidden = int(C * mlp_ratio)          # 64
    out_dims = C                         # out_dims=None -> in_dims

    k = jax.random.split(key, 6)
    x = jax.random.normal(k[0], (B, Hs, Ws, C), jnp.float32)
    leat_t = jnp.array([5, 1], dtype=jnp.int32)   # -> experts [2, 1] after % max_t

    # Deterministic synthetic parameters, stacked over experts.
    # Stored as (in, out) so y = x @ W + b (torch Linear semantics transposed).
    w1 = 0.05 * jax.random.normal(k[1], (max_t, C, 2 * hidden), jnp.float32)
    b1 = 0.05 * jax.random.normal(k[2], (max_t, 2 * hidden), jnp.float32)
    w2 = 0.05 * jax.random.normal(k[3], (max_t, hidden, out_dims), jnp.float32)
    b2 = 0.05 * jax.random.normal(k[4], (max_t, out_dims), jnp.float32)

    ref = reference(x, leat_t, w1, b1, w2, b2, max_t)

    # f32 MXU debug path (tight check against the f32 reference).
    params_f32 = prepare_moe_params(w1, b1, w2, b2, mxu_dtype=jnp.float32)
    out_f32 = jax.block_until_ready(mlp_moe(x, leat_t, params_f32, max_t=max_t))
    assert out_f32.shape == (B, Hs, Ws, out_dims), out_f32.shape
    np.testing.assert_allclose(np.asarray(out_f32), np.asarray(ref),
                               rtol=1e-5, atol=1e-5)

    # Default bf16-operand MXU path (perf config; f32 accumulation).
    params_bf16 = prepare_moe_params(w1, b1, w2, b2)
    out_bf16 = jax.block_until_ready(mlp_moe(x, leat_t, params_bf16, max_t=max_t))
    assert out_bf16.shape == (B, Hs, Ws, out_dims), out_bf16.shape
    np.testing.assert_allclose(np.asarray(out_bf16), np.asarray(ref),
                               rtol=5e-2, atol=5e-2)

    print("KERNEL_OK")
</pallas_src>

<mosaic_0001>
module attributes {stable_mosaic.version = 11 : i64} {
  func.func @mlp_moe_kernel(%arg0: i32, %arg1: i32, %arg2: memref<2xi32, #tpu.memory_space<smem>>, %arg3: memref<2xi32, #tpu.memory_space<smem>>, %arg4: memref<1x64x128xf32, #tpu.memory_space<vmem>>, %arg5: memref<1x128x128xf32, #tpu.memory_space<vmem>>, %arg6: memref<1x1x128xf32, #tpu.memory_space<vmem>>, %arg7: memref<1x128x128xf32, #tpu.memory_space<vmem>>, %arg8: memref<1x1x128xf32, #tpu.memory_space<vmem>>, %arg9: memref<1x128x128xf32, #tpu.memory_space<vmem>>, %arg10: memref<1x1x128xf32, #tpu.memory_space<vmem>>, %arg11: memref<1x64x128xf32, #tpu.memory_space<vmem>>) attributes {dimension_semantics = [#tpu.dimension_semantics<parallel>, #tpu.dimension_semantics<parallel>], iteration_bounds = array<i64: 2, 1>, scalar_prefetch = 2 : i64, scratch_operands = 0 : i64, tpu.core_type = #tpu.core_type<tc>, window_params = [{transform_indices = @transform_0, window_bounds = array<i64: 1, 64, 128>}, {pipeline_mode = #tpu.pipeline_mode<synchronous>, transform_indices = @transform_1, window_bounds = array<i64: 1, 128, 128>}, {pipeline_mode = #tpu.pipeline_mode<synchronous>, transform_indices = @transform_2, window_bounds = array<i64: 1, 1, 128>}, {pipeline_mode = #tpu.pipeline_mode<synchronous>, transform_indices = @transform_3, window_bounds = array<i64: 1, 128, 128>}, {pipeline_mode = #tpu.pipeline_mode<synchronous>, transform_indices = @transform_4, window_bounds = array<i64: 1, 1, 128>}, {pipeline_mode = #tpu.pipeline_mode<synchronous>, transform_indices = @transform_5, window_bounds = array<i64: 1, 128, 128>}, {pipeline_mode = #tpu.pipeline_mode<synchronous>, transform_indices = @transform_6, window_bounds = array<i64: 1, 1, 128>}, {transform_indices = @transform_7, window_bounds = array<i64: 1, 64, 128>}]} {
    %c0 = arith.constant 0 : index
    %c0_0 = arith.constant 0 : index
    %c0_1 = arith.constant 0 : index
    %0 = vector.load %arg4[%c0, %c0_0, %c0_1] : memref<1x64x128xf32, #tpu.memory_space<vmem>>, vector<1x64x128xf32>
    %1 = vector.shape_cast %0 : vector<1x64x128xf32> to vector<64x128xf32>
    %c0_2 = arith.constant 0 : index
    %c0_3 = arith.constant 0 : index
    %c0_4 = arith.constant 0 : index
    %2 = vector.load %arg5[%c0_2, %c0_3, %c0_4] : memref<1x128x128xf32, #tpu.memory_space<vmem>>, vector<1x128x128xf32>
    %3 = vector.shape_cast %2 : vector<1x128x128xf32> to vector<128x128xf32>
    %cst = arith.constant dense<0.000000e+00> : vector<64x128xf32>
    %4 = tpu.matmul %1, %3, %cst {dimension_numbers = #tpu.dot_dimension_numbers<[1], [0], [0], [1], [0, 0, 1, 1], [], []>} : vector<64x128xf32>, vector<128x128xf32>, vector<64x128xf32> -> vector<64x128xf32>
    %c0_5 = arith.constant 0 : index
    %c0_6 = arith.constant 0 : index
    %c0_7 = arith.constant 0 : index
    %5 = vector.load %arg6[%c0_5, %c0_6, %c0_7] : memref<1x1x128xf32, #tpu.memory_space<vmem>>, vector<1x1x128xf32>
    %6 = vector.shape_cast %5 : vector<1x1x128xf32> to vector<1x128xf32>
    %7 = vector.broadcast %6 : vector<1x128xf32> to vector<64x128xf32>
    %8 = arith.addf %4, %7 : vector<64x128xf32>
    %c0_8 = arith.constant 0 : index
    %c0_9 = arith.constant 0 : index
    %c0_10 = arith.constant 0 : index
    %9 = vector.load %arg7[%c0_8, %c0_9, %c0_10] : memref<1x128x128xf32, #tpu.memory_space<vmem>>, vector<1x128x128xf32>
    %10 = vector.shape_cast %9 : vector<1x128x128xf32> to vector<128x128xf32>
    %cst_11 = arith.constant dense<0.000000e+00> : vector<64x128xf32>
    %11 = tpu.matmul %1, %10, %cst_11 {dimension_numbers = #tpu.dot_dimension_numbers<[1], [0], [0], [1], [0, 0, 1, 1], [], []>} : vector<64x128xf32>, vector<128x128xf32>, vector<64x128xf32> -> vector<64x128xf32>
    %c0_12 = arith.constant 0 : index
    %c0_13 = arith.constant 0 : index
    %c0_14 = arith.constant 0 : index
    %12 = vector.load %arg8[%c0_12, %c0_13, %c0_14] : memref<1x1x128xf32, #tpu.memory_space<vmem>>, vector<1x1x128xf32>
    %13 = vector.shape_cast %12 : vector<1x1x128xf32> to vector<1x128xf32>
    %14 = vector.broadcast %13 : vector<1x128xf32> to vector<64x128xf32>
    %15 = arith.addf %11, %14 : vector<64x128xf32>
    %16 = arith.negf %15 : vector<64x128xf32>
    %17 = math.exp %16 : vector<64x128xf32>
    %cst_15 = arith.constant 1.000000e+00 : f32
    %18 = vector.broadcast %cst_15 : f32 to vector<64x128xf32>
    %19 = arith.addf %18, %17 : vector<64x128xf32>
    %20 = arith.divf %18, %19 : vector<64x128xf32>
    %21 = arith.mulf %15, %20 : vector<64x128xf32>
    %22 = arith.mulf %8, %21 : vector<64x128xf32>
    %c0_16 = arith.constant 0 : index
    %c0_17 = arith.constant 0 : index
    %c0_18 = arith.constant 0 : index
    %23 = vector.load %arg9[%c0_16, %c0_17, %c0_18] : memref<1x128x128xf32, #tpu.memory_space<vmem>>, vector<1x128x128xf32>
    %24 = vector.shape_cast %23 : vector<1x128x128xf32> to vector<128x128xf32>
    %cst_19 = arith.constant dense<0.000000e+00> : vector<64x128xf32>
    %25 = tpu.matmul %22, %24, %cst_19 {dimension_numbers = #tpu.dot_dimension_numbers<[1], [0], [0], [1], [0, 0, 1, 1], [], []>} : vector<64x128xf32>, vector<128x128xf32>, vector<64x128xf32> -> vector<64x128xf32>
    %c0_20 = arith.constant 0 : index
    %c0_21 = arith.constant 0 : index
    %c0_22 = arith.constant 0 : index
    %26 = vector.load %arg10[%c0_20, %c0_21, %c0_22] : memref<1x1x128xf32, #tpu.memory_space<vmem>>, vector<1x1x128xf32>
    %27 = vector.shape_cast %26 : vector<1x1x128xf32> to vector<1x128xf32>
    %28 = vector.broadcast %27 : vector<1x128xf32> to vector<64x128xf32>
    %29 = arith.addf %25, %28 : vector<64x128xf32>
    %c0_23 = arith.constant 0 : index
    %c0_24 = arith.constant 0 : index
    %c0_25 = arith.constant 0 : index
    %30 = vector.load %arg11[%c0_23, %c0_24, %c0_25] : memref<1x64x128xf32, #tpu.memory_space<vmem>>, vector<1x64x128xf32>
    %31 = vector.shape_cast %30 : vector<1x64x128xf32> to vector<64x128xf32>
    %32 = vector.shape_cast %29 : vector<64x128xf32> to vector<1x64x128xf32>
    tpu.vector_store %arg11[%c0_23, %c0_24, %c0_25], %32 {strides = array<i32>} : memref<1x64x128xf32, #tpu.memory_space<vmem>>, vector<1x64x128xf32>,
    return
  }
  func.func @transform_0(%arg0: i32, %arg1: i32, %arg2: memref<2xi32, #tpu.memory_space<smem>>, %arg3: memref<2xi32, #tpu.memory_space<smem>>) -> (i32, i32, i32) {
    %0 = arith.index_cast %arg0 : i32 to index
    %1 = memref.load %arg3[%0] : memref<2xi32, #tpu.memory_space<smem>>
    %c0_i32 = arith.constant 0 : i32
    %c0_i32_0 = arith.constant 0 : i32
    return %1, %arg1, %c0_i32 : i32, i32, i32
  }
  func.func @transform_1(%arg0: i32, %arg1: i32, %arg2: memref<2xi32, #tpu.memory_space<smem>>, %arg3: memref<2xi32, #tpu.memory_space<smem>>) -> (i32, i32, i32) {
    %0 = arith.index_cast %arg0 : i32 to index
    %1 = memref.load %arg2[%0] : memref<2xi32, #tpu.memory_space<smem>>
    %c0_i32 = arith.constant 0 : i32
    %c0_i32_0 = arith.constant 0 : i32
    %c0_i32_1 = arith.constant 0 : i32
    return %1, %c0_i32, %c0_i32_0 : i32, i32, i32
  }
  func.func @transform_2(%arg0: i32, %arg1: i32, %arg2: memref<2xi32, #tpu.memory_space<smem>>, %arg3: memref<2xi32, #tpu.memory_space<smem>>) -> (i32, i32, i32) {
    %0 = arith.index_cast %arg0 : i32 to index
    %1 = memref.load %arg2[%0] : memref<2xi32, #tpu.memory_space<smem>>
    %c0_i32 = arith.constant 0 : i32
    %c0_i32_0 = arith.constant 0 : i32
    %c0_i32_1 = arith.constant 0 : i32
    return %1, %c0_i32, %c0_i32_0 : i32, i32, i32
  }
  func.func @transform_3(%arg0: i32, %arg1: i32, %arg2: memref<2xi32, #tpu.memory_space<smem>>, %arg3: memref<2xi32, #tpu.memory_space<smem>>) -> (i32, i32, i32) {
    %0 = arith.index_cast %arg0 : i32 to index
    %1 = memref.load %arg2[%0] : memref<2xi32, #tpu.memory_space<smem>>
    %c0_i32 = arith.constant 0 : i32
    %c0_i32_0 = arith.constant 0 : i32
    %c0_i32_1 = arith.constant 0 : i32
    return %1, %c0_i32, %c0_i32_0 : i32, i32, i32
  }
  func.func @transform_4(%arg0: i32, %arg1: i32, %arg2: memref<2xi32, #tpu.memory_space<smem>>, %arg3: memref<2xi32, #tpu.memory_space<smem>>) -> (i32, i32, i32) {
    %0 = arith.index_cast %arg0 : i32 to index
    %1 = memref.load %arg2[%0] : memref<2xi32, #tpu.memory_space<smem>>
    %c0_i32 = arith.constant 0 : i32
    %c0_i32_0 = arith.constant 0 : i32
    %c0_i32_1 = arith.constant 0 : i32
    return %1, %c0_i32, %c0_i32_0 : i32, i32, i32
  }
  func.func @transform_5(%arg0: i32, %arg1: i32, %arg2: memref<2xi32, #tpu.memory_space<smem>>, %arg3: memref<2xi32, #tpu.memory_space<smem>>) -> (i32, i32, i32) {
    %0 = arith.index_cast %arg0 : i32 to index
    %1 = memref.load %arg2[%0] : memref<2xi32, #tpu.memory_space<smem>>
    %c0_i32 = arith.constant 0 : i32
    %c0_i32_0 = arith.constant 0 : i32
    %c0_i32_1 = arith.constant 0 : i32
    return %1, %c0_i32, %c0_i32_0 : i32, i32, i32
  }
  func.func @transform_6(%arg0: i32, %arg1: i32, %arg2: memref<2xi32, #tpu.memory_space<smem>>, %arg3: memref<2xi32, #tpu.memory_space<smem>>) -> (i32, i32, i32) {
    %0 = arith.index_cast %arg0 : i32 to index
    %1 = memref.load %arg2[%0] : memref<2xi32, #tpu.memory_space<smem>>
    %c0_i32 = arith.constant 0 : i32
    %c0_i32_0 = arith.constant 0 : i32
    %c0_i32_1 = arith.constant 0 : i32
    return %1, %c0_i32, %c0_i32_0 : i32, i32, i32
  }
  func.func @transform_7(%arg0: i32, %arg1: i32, %arg2: memref<2xi32, #tpu.memory_space<smem>>, %arg3: memref<2xi32, #tpu.memory_space<smem>>) -> (i32, i32, i32) {
    %0 = arith.index_cast %arg0 : i32 to index
    %1 = memref.load %arg3[%0] : memref<2xi32, #tpu.memory_space<smem>>
    %c0_i32 = arith.constant 0 : i32
    %c0_i32_0 = arith.constant 0 : i32
    return %1, %arg1, %c0_i32 : i32, i32, i32
  }
}

</mosaic_0001>

<bundles_post_ra>
// kernel: tpu_custom_call.1
= control target key start
LH: loop header
LB: loop body
LE: loop exit
PB: predicated region body
PF: predicated region fallthrough
CT: control target
= control target key end

     0   :  { %s1775_s15 = smov [#allocation3]   ;;  %s1776_s16 = smov [#allocation4]   ;;  %s2515_s0 = inlined_call_operand.hbm [shape: s32[2], index: 0, kind: input, shape index: {}]   ;;  %s2516_s2 = inlined_call_operand.hbm [shape: f32[2,64,128], index: 2, kind: input, shape index: {}]   ;;  %s2517_s3 = inlined_call_operand.hbm [shape: f32[3,128,128], index: 3, kind: input, shape index: {}]   ;;  %s2518_s4 = inlined_call_operand.vmem [shape: f32[3,1,128], index: 4, kind: input, shape index: {}]   ;;  %s2519_s5 = inlined_call_operand.hbm [shape: f32[3,128,128], index: 5, kind: input, shape index: {}]   ;;  %s2520_s6 = inlined_call_operand.hbm [shape: f32[3,1,128], index: 6, kind: input, shape index: {}]   ;;  %s2521_s7 = inlined_call_operand.hbm [shape: f32[3,128,128], index: 7, kind: input, shape index: {}]   ;;  %s2522_s8 = inlined_call_operand.vmem [shape: f32[3,1,128], index: 8, kind: input, shape index: {}]   ;;  %s2523_s9 = inlined_call_operand.hbm [shape: f32[2,64,128], index: 9, kind: output, shape index: {}]   ;;  %s2524_s1 = inlined_call_operand.hbm [shape: s32[2], index: 1, kind: input, shape index: {}]  }
   0x1   :  { %2571 = sst [smem:[#allocation55_spill]] %s2516_s2  ;;  %s15_s11 = sshll.u32 %s2515_s0, 4  ;;  %s16_s11 = int_to_ptr.hbm [resolvable:$true] %s15_s11 }
   0x2   :  { %2572 = sst [smem:[#allocation56_spill]] %s2517_s3  ;;  %s20_s14 = sshll.u32 %s2524_s1, 4  ;;  %s21_s14 = int_to_ptr.hbm [resolvable:$true] %s20_s14 }
   0x3   :  { %2573 = sst [smem:[#allocation57_spill]] %s2518_s4 }
   0x4   :  { %2574 = sst [smem:[#allocation58_spill]] %s2519_s5 }
   0x5   :  { %2575 = sst [smem:[#allocation59_spill]] %s2520_s6 }
   0x6   :  { %2576 = sst [smem:[#allocation60_spill]] %s2521_s7 }
   0x7   :  { %2577 = sst [smem:[#allocation61_spill]] %s2522_s8 }
   0x8   :  { %2578 = sst [smem:[#allocation62_spill]] %s2523_s9 }
   0x9   :  { %18 = dma.hbm_to_smem %s16_s11, 16, %s1775_s15, [#allocation2] }
   0xa   :  { %23 = dma.hbm_to_smem %s21_s14, 16, %s1776_s16, [#allocation2] }
   0xb   :  { %1665 = dma.done.wait [#allocation2], 32 }
   0xc   :  { %1666 = vsyncadd [#allocation2], 4294967264 }
   0xd   :  { %26 = sfence }
   0xe   :  { %27 = vsyncpa [#allocation6], 0 }
   0xf   :  { %29 = vsyncpa [#allocation6 + $0x1], 0 }
  0x10   :  { %30 = vsyncpa [#allocation9], 0 }
  0x11   :  { %31 = vsyncpa [#allocation12], 0 }
  0x12   :  { %32 = vsyncpa [#allocation7], 0 }
  0x13   :  { %34 = vsyncpa [#allocation7 + $0x1], 0  ;;  %s1841_s0 = smov 0   ;;  %s1843_s17 = smov 0  }
  0x14   :  { %s1845_s1 = smov 0   ;;  %s1847_s18 = smov 0  }
  0x15   :  { %s1849_s19 = smov 0   ;;  %s1851_s20 = smov 0  }
  0x16   :  { %s1853_s21 = smov 0   ;;  %s1855_s22 = smov 0  }
  0x17   :  { %s1857_s23 = smov 0   ;;  %s1859_s24 = smov 0  }
  0x18   :  { %s1861_s25 = smov 0   ;;  %s1863_s26 = smov 0  }
  0x19   :  { %s1865_s27 = smov 0   ;;  %s1867_s28 = smov 0  }
  0x1a   :  { %s1869_s29 = smov 0   ;;  %s1871_s30 = smov 0  }
  0x1b   :  { %s1873_s10 = smov 0   ;;  %s1875_s11 = smov 0  }
  0x1c   :  { %s1877_s12 = smov 0   ;;  %s1879_s13 = smov 0  }
  0x1d   :  { %s1881_s14 = smov 0  }
  0x1e LB: > { %2579 = sst [smem:[#allocation33_spill]] %s1693_s0  ;;  %s1035_s15 = sadd.s32 4294967295, %s1773_s14   ;;  %s1773_s14 = sphi %s1881_s14, %s40_s14   ;;  %s1769_s13 = sphi %s1879_s13, %s2687_s13   ;;  %s1765_s12 = sphi %s1877_s12, %s2686_s12   ;;  %s1761_s11 = sphi %s1875_s11, %s2685_s11   ;;  %s1757_s10 = sphi %s1873_s10, %s2684_s10   ;;  %s1753_s30 = sphi %s1871_s30, %s2683_s30   ;;  %s1749_s29 = sphi %s1869_s29, %s2682_s29   ;;  %s1745_s28 = sphi %s1867_s28, %s2681_s28   ;;  %s1741_s27 = sphi %s1865_s27, %s2680_s27   ;;  %s1737_s26 = sphi %s1863_s26, %s2679_s26   ;;  %s1733_s25 = sphi %s1861_s25, %s2669_s25   ;;  %s1729_s24 = sphi %s1859_s24, %s2668_s24   ;;  %s1725_s23 = sphi %s1857_s23, %s2678_s23   ;;  %s1721_s22 = sphi %s1855_s22, %s2667_s22   ;;  %s1717_s21 = sphi %s1853_s21, %s2677_s21   ;;  %s1713_s20 = sphi %s1851_s20, %s2675_s20   ;;  %s1709_s19 = sphi %s1849_s19, %s2665_s19   ;;  %s1705_s18 = sphi %s1847_s18, %s2664_s18   ;;  %s1701_s1 = sphi %s1845_s1, %s2715_s1   ;;  %s1697_s17 = sphi %s1843_s17, %s2663_s17   ;;  %s1693_s0 = sphi %s1841_s0, %s2662_s0  }
  0x1f   : > { %2580 = sst [smem:[#allocation34_spill]] %s1697_s17  ;;  %s1036_s16 = sadd.s32 4294967294, %s1773_s14  }
  0x20   : > { %2581 = sst [smem:[#allocation35_spill]] %s1701_s1  ;;  %p1946_p0 = scmp.eq.s32.totalorder %s1035_s15, 0 }
  0x21   : > { %2582 = sst [smem:[#allocation36_spill]] %s1709_s19  ;;  %p104_p1 = scmp.ne.s32.totalorder %s1745_s28, %s1741_s27 }
  0x22   : > { %2583 = sst [smem:[#allocation37_spill]] %s1713_s20  ;;  %p271_p2 = scmp.ne.s32.totalorder %s1701_s1, %s1697_s17 }
  0x23   : > { %2584 = sst [smem:[#allocation38_spill]] %s1721_s22  ;;  %p1955_p3 = por %p104_p1, %p1946_p0 }
  0x24   : > { %2585 = sst [smem:[#allocation39_spill]] %s1725_s23  ;;  %p272_p4 = scmp.eq.s32.totalorder %s1035_s15, 1 }
  0x25   : > { %2586 = sst [smem:[#allocation40_spill]] %s1733_s25  ;;  %p277_p5 = scmp.ne.s32.totalorder %s1697_s17, %s1693_s0 }
  0x26   : > { %2587 = sst [smem:[#allocation41_spill]] %s1737_s26  ;;  %p278_p6 = scmp.eq.s32.totalorder %s1036_s16, 1 }
  0x27   : > { %2588 = sst [smem:[#allocation42_spill]] %s1745_s28  ;;  %p1961_p7 = por %p272_p4, %p271_p2 }
  0x28   : > { %2589 = sst [smem:[#allocation43_spill]] %s1749_s29  ;;  %p1037_p8 = scmp.ge.s32.totalorder %s1773_s14, 1 }
  0x29   : > { %2590 = sst [smem:[#allocation44_spill]] %s1765_s12  ;;  %p1966_p9 = por %p278_p6, %p277_p5 }
  0x2a   : > { %s2592_s8 = scalar_select %p1955_p3, 1, 0 }
  0x2b   : > { %s2594_s4 = scalar_select %p1961_p7, 1, 0 }
  0x2c   : > { %2593 = sst [smem:[#allocation45_spill]] %s2592_s8  ;;  %p285_p10 = scmp.lt.s32.totalorder %s1773_s14, 3 }
  0x2d   : > { %2595 = sst [smem:[#allocation46_spill]] %s2594_s4  ;;  %s1777_s16 = smov [#allocation8]  }
  0x2e   : > { %s2596_s27 = scalar_select %p1966_p9, 1, 0 }
  0x2f   : > { %s1101_s28 = scalar_select %p1955_p3, [#allocation3], [#allocation15] }
  0x30   : > { %2597 = sst [smem:[#allocation47_spill]] %s2596_s27  ;;  %p1973_p11 = pnand %p1037_p8, %p285_p10 }
  0x31   : > { %s1102_s15 = scalar_select %p1955_p3, %s1765_s12, 0 }
  0x32   : > { %s2598_s2 = scalar_select %p1973_p11, 1, 0 }
  0x33   : > { %p2544_p12 = pneg %p1973_p11  ;;  %s1982_s0 = sshll.u32 %s1777_s16, 4  ;;  %s303_s0 = int_to_ptr.vmem [resolvable:$true] %s1982_s0 }
  0x34   : > { %2599 = sst [smem:[#allocation48_spill]] %s2598_s2  ;;  %s2689_s28 = smov (%p1973_p11, %s1101_s28), [#allocation21] }
  0x35   : > { %s2691_s15 = smov (%p1973_p11, %s1102_s15), 0  ;;  %p1993_p13 = pnand %p2544_p12, %p1955_p3 }
  0x36   : > { %s294_s4 = sld [smem:[%s2689_s28 + %s2691_s15]]  ;;  %p188_p2 = scmp.ne.s32.totalorder %s1721_s22, %s1717_s21 }
  0x37   : > { %s1778_s16 = smov [#allocation11]   ;;  %s2601_s3 = sld [smem:[#allocation56_spill]] }
  0x38   : > { %s2001_s1 = sshll.u32 %s1778_s16, 4  ;;  %p2008_p4 = por %p188_p2, %p1946_p0  ;;  %s346_s1 = int_to_ptr.vmem [resolvable:$true] %s2001_s1 }
  0x39   : > { %p1407_p8 = pneg %p1993_p13 }
  0x3a   : > { %s2602_s8 = scalar_select %p2008_p4, 1, 0 }
  0x3b   : > { %p2017_p5 = pnand %p2544_p12, %p2008_p4 }
  0x3c   : > { %s1064_s17 = sshll.u32 %s294_s4, 7  ;;  %2603 = sst [smem:[#allocation49_spill]] %s2602_s8 }
  0x3d   : > { %s299_s26 = scalar_lea.hbm %s2601_s3, %s1064_s17  ;;  %s1410_s23 = scalar_lea.hbm %s2601_s3, 384 }
  0x3e   : > { %s300_s29 = sshll.u32 %s299_s26, 4  ;;  %s301_s29 = int_to_ptr.hbm [resolvable:$true] %s300_s29 }
  0x3f   : > { %s1403_s21 = sshra.s32 %s301_s29, 4  ;;  %s1404_s21 = int_to_ptr.hbm [resolvable:$true] %s1403_s21 }
  0x40   : > { %s1405_s28 = scalar_lea.hbm %s1404_s21, 128  ;;  %p1411_p1 = scmp.lt.s32.totalorder %s1404_s21, %s2601_s3 }
  0x41   : > { %p1406_p6 = scmp.ne.s32.totalorder %s1404_s21, %s1405_s28  ;;  %p1412_p12 = scmp.lt.s32.totalorder %s1410_s23, %s1405_s28 }
  0x43   : > { %p1408_p10 = pnand %p1407_p8, %p1406_p6  ;;  %p1413_p9 = por %p1412_p12, %p1411_p1 }
  0x45   : > { %p1409_p2 = pneg %p1408_p10 }
  0x47   : > { %p1414_p7 = pnand %p1413_p9, %p1409_p2 }
  0x49   : > { %1417 = shalt.err (!%p1414_p7)
}
  0x4a   : > { %s2546_s16 = smov 128   ;;  %s2548_s21 = smov 8  }
  0x4b   : > { %1130 = dma.hbm_to_vmem [thread:$0]  (!%p1993_p13), %s301_s29, 2048, %s303_s0, [#allocation9], %s2546_s16, %s2546_s16, %s2548_s21  }
  0x4c   : > { %s1107_s28 = scalar_select %p2008_p4, [#allocation3], [#allocation17] }
  0x4d   : > { %s1108_s17 = scalar_select %p2008_p4, %s1765_s12, 0 }
  0x4e   : > { %s2693_s28 = smov (%p1973_p11, %s1107_s28), [#allocation23]  ;;  %p160_p7 = scmp.ne.s32.totalorder %s1733_s25, %s1729_s24 }
  0x4f   : > { %s2695_s17 = smov (%p1973_p11, %s1108_s17), 0  ;;  %s1781_s23 = smov [#allocation10]  }
  0x50   : > { %s338_s20 = sld [smem:[%s2693_s28 + %s2695_s17]]  ;;  %s2048_s26 = sshll.u32 %s1781_s23, 4 }
  0x51   : > { %2605 = sst [smem:[#allocation50_spill]] %s2048_s26  ;;  %p2052_p9 = por %p160_p7, %p1946_p0 }
  0x52   : > { %s2608_s6 = sld [smem:[#allocation59_spill]]  ;;  %p2609_p12 = pneg %p1973_p11 }
  0x53   : > { %s2606_s27 = scalar_select %p2052_p9, 1, 0 }
  0x54   : > { %p2064_p13 = pnand %p2609_p12, %p2052_p9  ;;  %p1437_p8 = pneg %p2017_p5 }
  0x55   : > { %2607 = sst [smem:[#allocation51_spill]] %s2606_s27 }
  0x58   : > { %s341_s15 = scalar_lea.hbm %s2608_s6, %s338_s20  ;;  %s1440_s29 = scalar_lea.hbm %s2608_s6, 3 }
  0x59   : > { %s343_s24 = sshll.u32 %s341_s15, 4  ;;  %s344_s24 = int_to_ptr.hbm [resolvable:$true] %s343_s24 }
  0x5a   : > { %s1433_s17 = sshra.s32 %s344_s24, 4  ;;  %s1434_s17 = int_to_ptr.hbm [resolvable:$true] %s1433_s17 }
  0x5b   : > { %s1435_s23 = scalar_lea.hbm %s1434_s17, 1  ;;  %p1441_p7 = scmp.lt.s32.totalorder %s1434_s17, %s2608_s6 }
  0x5c   : > { %p1436_p6 = scmp.ne.s32.totalorder %s1434_s17, %s1435_s23  ;;  %p1442_p12 = scmp.lt.s32.totalorder %s1440_s29, %s1435_s23 }
  0x5e   : > { %p1438_p10 = pnand %p1437_p8, %p1436_p6  ;;  %p1443_p4 = por %p1442_p12, %p1441_p7 }
  0x60   : > { %p1439_p2 = pneg %p1438_p10 }
  0x62   : > { %p1444_p1 = pnand %p1443_p4, %p1439_p2 }
  0x64   : > { %1447 = shalt.err (!%p1444_p1)
}
  0x65   : > { %1140 = dma.hbm_to_vmem [thread:$0]  (!%p2017_p5), %s344_s24, 16, %s346_s1, [#allocation12]  }
  0x66   : > { %s1104_s16 = scalar_select %p2052_p9, [#allocation3], [#allocation16] }
  0x67   : > { %s1105_s21 = scalar_select %p2052_p9, %s1765_s12, 0 }
  0x68   : > { %s2697_s16 = smov (%p1973_p11, %s1104_s16), [#allocation22]  ;;  %p2611_p4 = scmp.ne.s32.totalorder %s1709_s19, %s1705_s18 }
  0x69   : > { %s2699_s21 = smov (%p1973_p11, %s1105_s21), 0  ;;  %s1782_s17 = smov [#allocation13]  }
  0x6a   : > { %p2095_p1 = por %p2611_p4, %p1946_p0  ;;  %s320_s15 = sld [smem:[%s2697_s16 + %s2699_s21]] }
  0x6b   : > { %s2108_s23 = sshll.u32 %s1782_s17, 4  ;;  %p2615_p5 = pneg %p1973_p11 }
  0x6c   : > { %s2612_s4 = scalar_select %p2095_p1, 1, 0 }
  0x6d   : > { %s1110_s1 = scalar_select %p2095_p1, [#allocation3], [#allocation18] }
  0x6e   : > { %2613 = sst [smem:[#allocation52_spill]] %s2612_s4  ;;  %p2115_p6 = pnand %p2615_p5, %p2095_p1 }
  0x6f   : > { %s1111_s24 = scalar_select %p2095_p1, %s1765_s12, 0 }
  0x70   : > { %s2701_s1 = smov (%p1973_p11, %s1110_s1), [#allocation24]  ;;  %2614 = sst [smem:[#allocation53_spill]] %s2108_s23 }
  0x71   : > { %s2703_s24 = smov (%p1973_p11, %s1111_s24), 0  ;;  %s1065_s0 = sshll.u32 %s320_s15, 7 }
  0x72   : > { %s352_s20 = sld [smem:[%s2701_s1 + %s2703_s24]]  ;;  %p1467_p10 = pneg %p2064_p13 }
  0x73   : > { %s2617_s5 = sld [smem:[#allocation58_spill]] }
  0x79   : > { %s325_s21 = scalar_lea.hbm %s2617_s5, %s1065_s0  ;;  %s1470_s15 = scalar_lea.hbm %s2617_s5, 384 }
  0x7a   : > { %s326_s26 = sshll.u32 %s325_s21, 4  ;;  %s327_s26 = int_to_ptr.hbm [resolvable:$true] %s326_s26 }
  0x7b   : > { %s1463_s3 = sshra.s32 %s327_s26, 4  ;;  %s1464_s3 = int_to_ptr.hbm [resolvable:$true] %s1463_s3 }
  0x7c   : > { %s1465_s17 = scalar_lea.hbm %s1464_s3, 128  ;;  %p1471_p12 = scmp.lt.s32.totalorder %s1464_s3, %s2617_s5 }
  0x7d   : > { %p1466_p8 = scmp.ne.s32.totalorder %s1464_s3, %s1465_s17  ;;  %p1472_p4 = scmp.lt.s32.totalorder %s1470_s15, %s1465_s17 }
  0x7f   : > { %p1468_p2 = pnand %p1467_p10, %p1466_p8  ;;  %p1473_p5 = por %p1472_p4, %p1471_p12 }
  0x81   : > { %p1469_p7 = pneg %p1468_p2 }
  0x83   : > { %p1474_p1 = pnand %p1473_p5, %p1469_p7 }
  0x85   : > { %1477 = shalt.err (!%p1474_p1)
}
  0x86   : > { %s2618_s0 = smov 8   ;;  %s2619_s29 = smov 128  }
  0x87   : > { %s2620_s16 = sld [smem:[#allocation50_spill]]  ;;  %s1066_s23 = sshll.u32 %s352_s20, 7 }
  0x88   : > { %s2622_s7 = sld [smem:[#allocation60_spill]]  ;;  %p1497_p8 = pneg %p2115_p6 }
  0x8d   : > { %s2621_s21 = int_to_ptr.vmem [resolvable:$true] %s2620_s16 }
  0x8e   : > { %1135 = dma.hbm_to_vmem [thread:$0]  (!%p2064_p13), %s327_s26, 2048, %s2621_s21, [#allocation9], %s2619_s29, %s2619_s29, %s2618_s0  }
  0x8f   : > { %s357_s22 = scalar_lea.hbm %s2622_s7, %s1066_s23  ;;  %s1500_s24 = scalar_lea.hbm %s2622_s7, 384 }
  0x90   : > { %s358_s1 = sshll.u32 %s357_s22, 4  ;;  %s359_s1 = int_to_ptr.hbm [resolvable:$true] %s358_s1 }
  0x91   : > { %s1493_s3 = sshra.s32 %s359_s1, 4  ;;  %s1494_s3 = int_to_ptr.hbm [resolvable:$true] %s1493_s3 }
  0x92   : > { %s1495_s17 = scalar_lea.hbm %s1494_s3, 128  ;;  %p1501_p13 = scmp.lt.s32.totalorder %s1494_s3, %s2622_s7 }
  0x93   : > { %p1496_p1 = scmp.ne.s32.totalorder %s1494_s3, %s1495_s17  ;;  %p1502_p7 = scmp.lt.s32.totalorder %s1500_s24, %s1495_s17 }
  0x95   : > { %p1498_p10 = pnand %p1497_p8, %p1496_p1  ;;  %p1503_p12 = por %p1502_p7, %p1501_p13 }
  0x97   : > { %p1499_p2 = pneg %p1498_p10 }
  0x99   : > { %p1504_p4 = pnand %p1503_p12, %p1499_p2 }
  0x9b   : > { %1507 = shalt.err (!%p1504_p4)
}
  0x9c   : > { %s2623_s22 = sld [smem:[#allocation53_spill]]  ;;  %s52_s18 = sadd.s32 1, %s1769_s13 }
  0x9d   : > { %s2625_s16 = sld [smem:[#allocation43_spill]]  ;;  %p54_p5 = scmp.ge.s32.totalorder %s52_s18, 2 }
  0x9e   : > { %s2626_s21 = sld [smem:[#allocation41_spill]]  ;;  %s63_s17 = sadd.s32 1, %s1761_s11 }
  0x9f   : > { %s2627_s6 = sld [smem:[#allocation39_spill]]  ;;  %s2705_s18 = smov (%p54_p5, %s52_s18), 0 }
  0xa0   : > { %s56_s25 = sld [smem:[#allocation4 + %s1769_s13]]  ;;  %s2630_s28 = smov %s2705_s18 }
  0xa1   : > { %s2628_s3 = sld [smem:[#allocation37_spill]]  ;;  %p70_p1 = scmp.ne.s32.totalorder %s1761_s11, %s1757_s10 }
  0xa2   : > { %s2624_s23 = int_to_ptr.vmem [resolvable:$true] %s2623_s22  ;;  %2629 = sst [smem:[#allocation54_spill]] %s2705_s18 }
  0xa3   : > { %1145 = dma.hbm_to_vmem [thread:$0]  (!%p2115_p6), %s359_s1, 2048, %s2624_s23, [#allocation12], %s2619_s29, %s2619_s29, %s2618_s0  }
  0xa4   : > { %p76_p8 = scmp.ne.s32.totalorder %s1757_s10, %s1753_s30  ;;  %s57_s15 = sld [smem:[#allocation4 + %s2630_s28]] }
  0xa5   : > { %p71_p10 = scmp.eq.s32.totalorder %s1773_s14, 0  ;;  %s86_s24 = sld [smem:[#allocation3 + %s1769_s13]] }
  0xa6   : > { %p2169_p6 = por %p1946_p0, %p76_p8  ;;  %s87_s26 = sld [smem:[#allocation3 + %s2630_s28]] }
  0xa7   : > { %s91_s20 = sadd.s32 1, %s2625_s16  ;;  %s142_s22 = sld [smem:[#allocation3 + %s1769_s13]] }
  0xa8   : > { %s2631_s1 = scalar_select %p2169_p6, 1, 0 }
  0xa9   : > { %s147_s23 = sadd.s32 1, %s2626_s21  ;;  %s143_s18 = sld [smem:[#allocation3 + %s2630_s28]] }
  0xaa   : > { %2632 = sst [smem:[#allocation50_spill]] %s2631_s1  ;;  %s175_s30 = sadd.s32 1, %s2627_s6 }
  0xab   : > { %s170_s5 = sld [smem:[#allocation3 + %s1769_s13]]  ;;  %s203_s7 = sadd.s32 1, %s2628_s3 }
  0xac   : > { %s58_s19 = ssub.s32 %s56_s25, %s57_s15  ;;  %s171_s9 = sld [smem:[#allocation3 + %s2630_s28]] }
  0xad   : > { %p61_p0 = scmp.eq.s32.totalorder %s58_s19, 0  ;;  %s198_s12 = sld [smem:[#allocation3 + %s1769_s13]] }
  0xae   : > { %s88_s4 = ssub.s32 %s86_s24, %s87_s26  ;;  %s199_s8 = sld [smem:[#allocation3 + %s2630_s28]] }
  0xaf   : > { %s2186_s27 = scalar_select %p61_p0, %s1761_s11, %s63_s17  }
  0xb0   : > { %s2633_s1 = sld [smem:[#allocation35_spill]]  ;;  %p89_p2 = scmp.eq.s32.totalorder %s88_s4, 0 }
  0xb1   : > { %s144_s2 = ssub.s32 %s142_s22, %s143_s18  ;;  %s254_s25 = sld [smem:[#allocation4 + %s1769_s13]] }
  0xb2   : > { %p145_p13 = scmp.eq.s32.totalorder %s144_s2, 0  ;;  %s2707_s16 = smov (!%p89_p2, %s2625_s16), %s91_s20 }
  0xb3   : > { %s172_s19 = ssub.s32 %s170_s5, %s171_s9  ;;  %p2200_p4 = por %p71_p10, %p70_p1 }
  0xb4   : > { %s2709_s21 = smov (!%p145_p13, %s2626_s21), %s147_s23  ;;  %s200_s15 = ssub.s32 %s198_s12, %s199_s8 }
  0xb5   : > { %p173_p7 = scmp.eq.s32.totalorder %s172_s19, 0  ;;  %p201_p12 = scmp.eq.s32.totalorder %s200_s15, 0 }
  0xb6   : > { %s255_s2 = sld [smem:[#allocation4 + %s2630_s28]]  ;;  %s382_s5 = sand.u32 1, %s1761_s11  }
  0xb7   : > { %s2711_s6 = smov (!%p173_p7, %s2627_s6), %s175_s30  ;;  %s2713_s3 = smov (!%p201_p12, %s2628_s3), %s203_s7 }
  0xb8   : > { %s261_s4 = sadd.s32 1, %s2633_s1  ;;  %p1164_p5 = scmp.lt.s32.totalorder %s1773_s14, 2 }
  0xb9   : > { %s1113_s8 = scalar_select %p2200_p4, [#allocation4], [#allocation19] }
  0xba   : > { %s1045_s24 = sshll.u32 %s382_s5, 6  ;;  %p2218_p1 = pnand %p1164_p5, %p2200_p4 }
  0xbb   : > { %s1114_s20 = scalar_select %p2200_p4, %s1769_s13, 0 }
  0xbc   : > { %s256_s12 = ssub.s32 %s254_s25, %s255_s2  ;;  %s2717_s8 = smov (!%p1164_p5, %s1113_s8), [#allocation25] }
  0xbd   : > { %p259_p8 = scmp.eq.s32.totalorder %s256_s12, 0  ;;  %s2719_s20 = smov (!%p1164_p5, %s1114_s20), 0 }
  0xbe   : > { %s387_s7 = sld [smem:[%s2717_s8 + %s2719_s20]]  ;;  %s386_s22 = scalar_lea.vmem [#allocation5], %s1045_s24 }
  0xbf   : > { %s2715_s1 = smov (!%p259_p8, %s2633_s1), %s261_s4  ;;  %s397_s23 = sshll.u32 %s386_s22, 4  ;;  %s398_s23 = int_to_ptr.vmem [resolvable:$true] %s397_s23 }
  0xc0   : > { %s2636_s25 = sld [smem:[#allocation55_spill]]  ;;  %s383_s12 = scalar_lea.sflag [#allocation6], %s382_s5 }
  0xc1   : > { %p1527_p0 = pneg %p2218_p1 }
  0xc4   : > { %s1067_s18 = sshll.u32 %s387_s7, 6 }
  0xc6   : > { %s2637_s15 = smov %s2636_s25  ;;  %s394_s19 = scalar_lea.hbm %s2636_s25, %s1067_s18 }
  0xc7   : > { %s395_s2 = sshll.u32 %s394_s19, 4  ;;  %s1530_s24 = scalar_lea.hbm %s2637_s15, 128  ;;  %s396_s2 = int_to_ptr.hbm [resolvable:$true] %s395_s2 }
  0xc8   : > { %s1523_s28 = sshra.s32 %s396_s2, 4  ;;  %s1524_s28 = int_to_ptr.hbm [resolvable:$true] %s1523_s28 }
  0xc9   : > { %s1525_s17 = scalar_lea.hbm %s1524_s28, 64  ;;  %p1531_p7 = scmp.lt.s32.totalorder %s1524_s28, %s2637_s15 }
  0xca   : > { %p1526_p10 = scmp.ne.s32.totalorder %s1524_s28, %s1525_s17  ;;  %p1532_p12 = scmp.lt.s32.totalorder %s1530_s24, %s1525_s17 }
  0xcc   : > { %p1528_p2 = pnand %p1527_p0, %p1526_p10  ;;  %p1533_p4 = por %p1532_p12, %p1531_p7 }
  0xce   : > { %p1529_p13 = pneg %p1528_p2 }
  0xd0   : > { %p1534_p5 = pnand %p1533_p4, %p1529_p13 }
  0xd2   : > { %1537 = shalt.err (!%p1534_p5)
}
  0xd3   : > { %1151 = dma.hbm_to_vmem [thread:$0]  (!%p2218_p1), %s396_s2, 1024, %s398_s23, %s383_s12, %s2619_s29, %s2619_s29, %s2618_s0  }
  0xd4   : > { %409 = sbr.rel (%p1973_p11) target bundleno = 627 (0x273), region = 48  ;;  %s411_s18 = sand.u32 (!%p1973_p11), 1, %s1757_s10  }
  0xd5   : > { %s1049_s30 = sshll.u32 (!%p1973_p11), %s411_s18, 6  ;;  %s412_s9 = scalar_lea.sflag (!%p1973_p11), [#allocation6], %s411_s18 }
  0xd6   : > { %s2247_s25 = scalar_lea.vmem (!%p1973_p11), [#allocation5], %s1049_s30 }
  0xd9   : > { %1668 = dma.done.wait (%p2169_p6), %s412_s9, 1024  }
  0xda   : > { %1670 = vsyncadd (%p2169_p6), %s412_s9, 4294966272 }
  0xdb   : > { %1672 = dma.done.wait (%p1955_p3), [#allocation9], 2048  }
  0xdc   : > { %1674 = vsyncadd (%p1955_p3), [#allocation9], 4294965248 }
  0xdd   : > { %1676 = dma.done.wait (%p2052_p9), [#allocation9], 2048  }
  0xde   : > { %1678 = vsyncadd (%p2052_p9), [#allocation9], 4294965248  ;;  %s2642_s29 = sld [smem:[#allocation49_spill]] }
  0xe4   : > { %p2643_p11 = scmp.ne.s32.totalorder %s2642_s29, 0 }
  0xe6   : > { %1680 = dma.done.wait (%p2643_p11), [#allocation12], 16  }
  0xe7   : > { %1682 = vsyncadd (%p2643_p11), [#allocation12], 4294967280  ;;  %s2644_s26 = sld [smem:[#allocation52_spill]] }
  0xed   : > { %p2645_p6 = scmp.ne.s32.totalorder %s2644_s26, 0 }
  0xef   : > { %1684 = dma.done.wait (%p2645_p6), [#allocation12], 2048  }
  0xf0   : > { %1686 = vsyncadd (%p2645_p6), [#allocation12], 4294965248  ;;  %v516_v0 = vld [vmem:[#allocation8 + $0x78] sm:$0xff]  ;;  %v515_v2 = vld [vmem:[#allocation8 + $0x70] sm:$0xff]  ;;  %s2646_s23 = sld [smem:[#allocation44_spill]] }
  0xf1   : > { %v2269_v1 = vld [vmem:[#allocation10 + $0x78] sm:$0xff]  ;;  %1069 = vmatpush.msra.mxu3 %v516_v0  ;;  %v2272_v3 = vld [vmem:[#allocation10 + $0x70] sm:$0xff]  ;;  %v514_v4 = vld [vmem:[#allocation8 + $0x68] sm:$0xff]  ;;  %521 = vmatpush.msra.mxu0 %v516_v0  ;;  %s2647_s17 = sld [smem:[#allocation57_spill]] }
  0xf2   : > { %582 = vmatpush.msra.mxu1 %v2269_v1  ;;  %v2274_v5 = vld [vmem:[#allocation10 + $0x68] sm:$0xff]  ;;  %v513_v6 = vld [vmem:[#allocation8 + $0x60] sm:$0xff]  ;;  %v512_v8 = vld [vmem:[#allocation8 + $0x58] sm:$0xff]  ;;  %s2649_s5 = sld [smem:[#allocation61_spill]] }
  0xf3   : > { %1070 = vmatpush.msra.mxu3 %v515_v2  ;;  %v2277_v7 = vld [vmem:[#allocation10 + $0x60] sm:$0xff]  ;;  %522 = vmatpush.msra.mxu0 %v515_v2  ;;  %v2280_v9 = vld [vmem:[#allocation10 + $0x58] sm:$0xff]  ;;  %v511_v10 = vld [vmem:[#allocation8 + $0x50] sm:$0xff]  ;;  %s2652_s9 = sld [smem:[#allocation34_spill]] }
  0xf4   : > { %583 = vmatpush.msra.mxu1 %v2272_v3  ;;  %v2283_v11 = vld [vmem:[#allocation10 + $0x50] sm:$0xff]  ;;  %v510_v12 = vld [vmem:[#allocation8 + $0x48] sm:$0xff]  ;;  %v509_v14 = vld [vmem:[#allocation8 + $0x40] sm:$0xff]  ;;  %s2653_s26 = sld [smem:[#allocation46_spill]] }
  0xf5   : > { %1071 = vmatpush.msra.mxu3 %v514_v4  ;;  %523 = vmatpush.msra.mxu0 %v514_v4  ;;  %v2286_v13 = vld [vmem:[#allocation10 + $0x48] sm:$0xff]  ;;  %v2289_v15 = vld [vmem:[#allocation10 + $0x40] sm:$0xff]  ;;  %v508_v16 = vld [vmem:[#allocation8 + $0x38] sm:$0xff]  ;;  %s2655_s20 = sld [smem:[#allocation62_spill]] }
  0xf6   : > { %584 = vmatpush.msra.mxu1 %v2274_v5  ;;  %v569_v17 = vld [vmem:[#allocation10 + $0x38] sm:$0xff]  ;;  %v507_v18 = vld [vmem:[#allocation8 + $0x30] sm:$0xff]  ;;  %v506_v20 = vld [vmem:[#allocation8 + $0x28] sm:$0xff]  ;;  %s478_s19 = sld [smem:[#allocation3 + %s2646_s23]] }
  0xf7   : > { %1072 = vmatpush.msra.mxu3 %v513_v6  ;;  %524 = vmatpush.msra.mxu0 %v513_v6  ;;  %v568_v19 = vld [vmem:[#allocation10 + $0x30] sm:$0xff]  ;;  %v567_v21 = vld [vmem:[#allocation10 + $0x28] sm:$0xff]  ;;  %v505_v22 = vld [vmem:[#allocation8 + $0x20] sm:$0xff]  ;;  %s486_s24 = sld [smem:[#allocation3 + %s2646_s23]] }
  0xf8   : > { %585 = vmatpush.msra.mxu1 %v2277_v7  ;;  %v566_v23 = vld [vmem:[#allocation10 + $0x20] sm:$0xff]  ;;  %v504_v24 = vld [vmem:[#allocation8 + $0x18] sm:$0xff]  ;;  %v503_v26 = vld [vmem:[#allocation8 + $0x10] sm:$0xff] }
  0xf9   : > { %1073 = vmatpush.msra.mxu3 %v512_v8  ;;  %525 = vmatpush.msra.mxu0 %v512_v8  ;;  %v565_v25 = vld [vmem:[#allocation10 + $0x18] sm:$0xff]  ;;  %v564_v27 = vld [vmem:[#allocation10 + $0x10] sm:$0xff]  ;;  %v502_v28 = vld [vmem:[#allocation8 + $0x8] sm:$0xff] }
  0xfa   : > { %586 = vmatpush.msra.mxu1 %v2280_v9  ;;  %v563_v29 = vld [vmem:[#allocation10 + $0x8] sm:$0xff]  ;;  %v501_v30 = vld [vmem:[#allocation8] sm:$0xff]  ;;  %v499_v33 = vld [vmem:[%s2247_s25 + $0x30] sm:$0xff]  ;;  %p2654_p8 = scmp.ne.s32.totalorder %s2653_s26, 0 }
  0xfb   : > { %1074 = vmatpush.msra.mxu3 %v511_v10  ;;  %526 = vmatpush.msra.mxu0 %v511_v10  ;;  %v562_v31 = vld [vmem:[#allocation10] sm:$0xff]  ;;  %v494_v34 = vld [vmem:[%s2247_s25 + $0x8] sm:$0xff]  ;;  %v500_v35 = vld [vmem:[%s2247_s25 + $0x38] sm:$0xff]  ;;  %s2656_s7 = smov %s2655_s20 }
  0xfc   : > { %587 = vmatpush.msra.mxu1 %v2283_v11  ;;  %v493_v32 = vld [vmem:[%s2247_s25] sm:$0xff]  ;;  %v495_v36 = vld [vmem:[%s2247_s25 + $0x10] sm:$0xff]  ;;  %v496_v37 = vld [vmem:[%s2247_s25 + $0x18] sm:$0xff]  ;;  %p479_p3 = scmp.lt.s32.totalorder %s478_s19, 2  ;;  %s2725_s23 = smov (!%p2654_p8, %s2646_s23), 0 }
  0xfd   : > { %1075 = vmatpush.msra.mxu3 %v510_v12  ;;  %527 = vmatpush.msra.mxu0 %v510_v12  ;;  %v497_v38 = vld [vmem:[%s2247_s25 + $0x20] sm:$0xff]  ;;  %v498_v39 = vld [vmem:[%s2247_s25 + $0x28] sm:$0xff]  ;;  %p487_p9 = scmp.lt.s32.totalorder %s486_s24, 2  ;;  %v805_v41 = vld [vmem:[#allocation13 + $0x70] sm:$0xff]  ;;  %s472_s25 = sand.u32 1, %s2652_s9  }
  0xfe   : > { %588 = vmatpush.msra.mxu1 %v2286_v13  ;;  %s2721_s19 = smov (!%p479_p3, %s478_s19), 2  ;;  %v806_v40 = vld [vmem:[#allocation13 + $0x78] sm:$0xff]  ;;  %v804_v42 = vld [vmem:[#allocation13 + $0x68] sm:$0xff]  ;;  %v803_v43 = vld [vmem:[#allocation13 + $0x60] sm:$0xff]  ;;  %s1050_s28 = sshll.u32 %s472_s25, 6 }
  0xff   : > { %1076 = vmatpush.msra.mxu3 %v509_v14  ;;  %528 = vmatpush.msra.mxu0 %v509_v14  ;;  %s481_s8 = scalar_lea.vmem %s2647_s17, %s2721_s19  ;;  %s2723_s24 = smov (!%p487_p9, %s486_s24), 2  ;;  %v802_v44 = vld [vmem:[#allocation13 + $0x58] sm:$0xff]  ;;  %v801_v45 = vld [vmem:[#allocation13 + $0x50] sm:$0xff]  ;;  %v800_v46 = vld [vmem:[#allocation13 + $0x48] sm:$0xff] }
 0x100   : > { %589 = vmatpush.msra.mxu1 %v2289_v15  ;;  %811 = vmatpush.msra.mxu2 %v806_v40  ;;  %s489_s22 = scalar_lea.vmem %s2649_s5, %s2723_s24  ;;  %v799_v47 = vld [vmem:[#allocation13 + $0x40] sm:$0xff]  ;;  %v798_v48 = vld [vmem:[#allocation13 + $0x38] sm:$0xff]  ;;  %v797_v49 = vld [vmem:[#allocation13 + $0x30] sm:$0xff]  ;;  %s2410_s19 = scalar_lea.vmem [#allocation14], %s1050_s28 }
 0x101   : > { %1077 = vmatpush.msra.mxu3 %v508_v16  ;;  %529 = vmatpush.msra.mxu0 %v508_v16  ;;  %v796_v50 = vld [vmem:[#allocation13 + $0x28] sm:$0xff]  ;;  %v795_v51 = vld [vmem:[#allocation13 + $0x20] sm:$0xff]  ;;  %v794_v52 = vld [vmem:[#allocation13 + $0x18] sm:$0xff]  ;;  %s1121_s2 = scalar_select %p2654_p8, [#allocation4], [#allocation20] }
 0x102   : > { %590 = vmatpush.msra.mxu1 %v569_v17  ;;  %812 = vmatpush.msra.mxu2 %v805_v41  ;;  %v2323_v53 = vld [vmem:[#allocation11] ss:$0 sm:$0xff]  ;;  %v793_v54 = vld [vmem:[#allocation13 + $0x10] sm:$0xff]  ;;  %v792_v56 = vld [vmem:[#allocation13 + $0x8] sm:$0xff]  ;;  %s876_s18 = sshll.u32 %s2410_s19, 4  ;;  %s877_s18 = int_to_ptr.vmem [resolvable:$true] %s876_s18 }
 0x103   : > { %1078 = vmatpush.msra.mxu3 %v507_v18  ;;  %530 = vmatpush.msra.mxu0 %v507_v18  ;;  %v791_v58 = vld [vmem:[#allocation13] sm:$0xff]  ;;  %v2341_v12 = vld [vmem:[%s481_s8] ss:$0 sm:$0xff]  ;;  %s868_s12 = sld [smem:[%s1121_s2 + %s2725_s23]]  ;;  %s861_s23 = scalar_lea.sflag [#allocation7], %s472_s25 }
 0x104   : > { %591 = vmatpush.msra.mxu1 %v568_v19  ;;  %813 = vmatpush.msra.mxu2 %v804_v42 }
 0x105   : > { %1079 = vmatpush.msra.mxu3 %v506_v20  ;;  %531 = vmatpush.msra.mxu0 %v506_v20 }
 0x106   : > { %592 = vmatpush.msra.mxu1 %v567_v21  ;;  %814 = vmatpush.msra.mxu2 %v803_v43 }
 0x107   : > { %1080 = vmatpush.msra.mxu3 %v505_v22  ;;  %532 = vmatpush.msra.mxu0 %v505_v22 }
 0x108   : > { %593 = vmatpush.msra.mxu1 %v566_v23  ;;  %815 = vmatpush.msra.mxu2 %v802_v44 }
 0x109   : > { %1081 = vmatpush.msra.mxu3 %v504_v24  ;;  %533 = vmatpush.msra.mxu0 %v504_v24  ;;  %s1068_s17 = sshll.u32 %s868_s12, 6  ;;  %s1573_s12 = scalar_lea.hbm %s2656_s7, 128 }
 0x10a   : > { %594 = vmatpush.msra.mxu1 %v565_v25  ;;  %816 = vmatpush.msra.mxu2 %v801_v45 }
 0x10b   : > { %1082 = vmatpush.msra.mxu3 %v503_v26  ;;  %534 = vmatpush.msra.mxu0 %v503_v26 }
 0x10c   : > { %595 = vmatpush.msra.mxu1 %v564_v27  ;;  %817 = vmatpush.msra.mxu2 %v800_v46 }
 0x10d   : > { %1083 = vmatpush.msra.mxu3 %v502_v28  ;;  %535 = vmatpush.msra.mxu0 %v502_v28 }
 0x10e   : > { %596 = vmatpush.msra.mxu1 %v563_v29  ;;  %818 = vmatpush.msra.mxu2 %v799_v47 }
 0x10f   : > { %1084 = vmatpush.msra.mxu3 %v501_v30  ;;  %536 = vmatpush.msra.mxu0 %v501_v30 }
 0x110   : > { %597 = vmatpush.msra.mxu1 %v562_v31  ;;  %555 = vmatmul.f32.vlgmr.msra.gmra.mxu3 %v499_v33 }
 0x111   : > { %1085 = vmatpush.msrb.mxu3 %v2269_v1  ;;  %598 = vmatmul.f32.vlgmr.msra.gmra.mxu1 %v493_v32 }
 0x112   : > { %537 = vmatmul.f32.vlgmr.msra.gmra.mxu0 %v493_v32  ;;  %819 = vmatpush.msra.mxu2 %v798_v48 }
 0x113   : > { %1086 = vmatpush.msrb.mxu3 %v2272_v3 }
 0x114   : > { %820 = vmatpush.msra.mxu2 %v797_v49 }
 0x115   : > { %1087 = vmatpush.msrb.mxu3 %v2274_v5 }
 0x116   : > { %821 = vmatpush.msra.mxu2 %v796_v50 }
 0x117   : > { %1088 = vmatpush.msrb.mxu3 %v2277_v7 }
 0x118   : > { %558 = vmatmul.f32.gmra.mxu3 %v500_v35  ;;  %822 = vmatpush.msra.mxu2 %v795_v51 }
 0x119   : > { %1089 = vmatpush.msrb.mxu3 %v2280_v9  ;;  %601 = vmatmul.f32.gmra.mxu1 %v494_v34 }
 0x11a   : > { %540 = vmatmul.f32.gmra.mxu0 %v494_v34  ;;  %823 = vmatpush.msra.mxu2 %v794_v52 }
 0x11b   : > { %1090 = vmatpush.msrb.mxu3 %v2283_v11 }
 0x11c   : > { %824 = vmatpush.msra.mxu2 %v793_v54 }
 0x11d   : > { %1091 = vmatpush.msrb.mxu3 %v2286_v13 }
 0x11e   : > { %825 = vmatpush.msra.mxu2 %v792_v56 }
 0x11f   : > { %1092 = vmatpush.msrb.mxu3 %v2289_v15 }
 0x120   : > { %826 = vmatpush.msra.mxu2 %v791_v58 }
 0x121   : > { %1093 = vmatpush.msrb.mxu3 %v569_v17  ;;  %604 = vmatmul.f32.gmra.mxu1 %v495_v36 }
 0x122   : > { %543 = vmatmul.f32.gmra.mxu0 %v495_v36 }
 0x123   : > { %1094 = vmatpush.msrb.mxu3 %v568_v19 }
 0x125   : > { %1095 = vmatpush.msrb.mxu3 %v567_v21 }
 0x127   : > { %1096 = vmatpush.msrb.mxu3 %v566_v23 }
 0x129   : > { %1097 = vmatpush.msrb.mxu3 %v565_v25  ;;  %607 = vmatmul.f32.gmra.mxu1 %v496_v37 }
 0x12a   : > { %546 = vmatmul.f32.gmra.mxu0 %v496_v37 }
 0x12b   : > { %1098 = vmatpush.msrb.mxu3 %v564_v27 }
 0x12d   : > { %1099 = vmatpush.msrb.mxu3 %v563_v29 }
 0x12f   : > { %1100 = vmatpush.msrb.mxu3 %v562_v31 }
 0x130   : > { %619 = vmatmul.f32.vlgmr.msrb.gmra.mxu3 %v500_v35 }
 0x131   : > { %610 = vmatmul.f32.gmra.mxu1 %v497_v38 }
 0x132   : > { %549 = vmatmul.f32.gmra.mxu0 %v497_v38 }
 0x139   : > { %613 = vmatmul.f32.gmra.mxu1 %v498_v39 }
 0x13a   : > { %552 = vmatmul.f32.gmra.mxu0 %v498_v39 }
 0x141   : > { %616 = vmatmul.f32.gmra.mxu1 %v499_v33 }
 0x18e   : > { %v599_v55 = vpop.f32.mrf.mxu1 }
 0x18f   : > { %v600_v57 = vadd.f32 %v2323_v53, %v599_v55  ;;  %v538_v4 = vpop.f32.mrf.mxu0 }
 0x190   : > { %v539_v25 = vadd.f32 %v2341_v12, %v538_v4 }
 0x191   : > { %v1051_v59 = vmul.f32 -1.442695, %v600_v57 }
 0x193   : > { %1347 = vpow2.f32 %v1051_v59  ;;  %v2333_v3 = vpop.f32.mrf.mxu3 }
 0x196   : > { %v602_v60 = vpop.f32.mrf.mxu1 }
 0x197   : > { %v2327_v61 = vadd.f32 %v2323_v53, %v602_v60  ;;  %v541_v21 = vpop.f32.mrf.mxu0 }
 0x198   : > { %v542_v48 = vadd.f32 %v2341_v12, %v541_v21 }
 0x199   : > { %v1348_v62 = vpop.eup %1347  ;;  %v1052_v63 = vmul.f32 -1.442695, %v2327_v61 }
 0x19a   : > { %v647_v0 = vadd.f32 1.0, %v1348_v62 }
 0x19b   : > { %1349 = vpow2.f32 %v1052_v63  ;;  %v2347_v20 = vpop.f32.mrf.mxu3 }
 0x19c   : > { %1351 = vrcp.f32 %v647_v0  ;;  %v666_v11 = vand.u32 2147483648, %v647_v0  ;;  %v664_v15 = vand.u32 2147483647, %v647_v0  ;;  %vm660_vm1 = vweird.f32 %v647_v0 }
 0x19e   : > { %v605_v1 = vpop.f32.mrf.mxu1  ;;  %v667_v23 = vor.u32 1.1754944e-38, %v666_v11  ;;  %vm665_vm3 = vcmp.eq.f32.partialorder %v664_v15, 8.507059e+37 }
 0x19f   : > { %v2331_v2 = vadd.f32 %v2323_v53, %v605_v1  ;;  %v544_v46 = vpop.f32.mrf.mxu0 }
 0x1a0   : > { %v545_v4 = vadd.f32 %v2341_v12, %v544_v46 }
 0x1a1   : > { %v1350_v5 = vpop.eup %1349  ;;  %v1053_v6 = vmul.f32 -1.442695, %v2331_v2 }
 0x1a2   : > { %v1352_v7 = vpop.eup %1351  ;;  %v648_v8 = vadd.f32 1.0, %v1350_v5 }
 0x1a3   : > { %v656_v9 = vmul.f32 %v1352_v7, %v647_v0  ;;  %1353 = vpow2.f32 %v1053_v6  ;;  %vm661_vm0 = vweird.f32 %v1352_v7 }
 0x1a4   : > { %1355 = vrcp.f32 %v648_v8  ;;  %vm662_vm2 = vmor %vm660_vm1, %vm661_vm0  ;;  %v679_v31 = vand.u32 2147483647, %v648_v8  ;;  %v681_v32 = vand.u32 2147483648, %v648_v8  ;;  %vm675_vm5 = vweird.f32 %v648_v8 }
 0x1a5   : > { %v657_v10 = vsub.f32 1.0, %v656_v9 }
 0x1a6   : > { %v608_v13 = vpop.f32.mrf.mxu1  ;;  %v682_v41 = vor.u32 1.1754944e-38, %v681_v32  ;;  %vm680_vm7 = vcmp.eq.f32.partialorder %v679_v31, 8.507059e+37 }
 0x1a7   : > { %v658_v14 = vmul.f32 %v1352_v7, %v657_v10  ;;  %v2344_v16 = vadd.f32 %v2323_v53, %v608_v13  ;;  %v547_v10 = vpop.f32.mrf.mxu0 }
 0x1a9   : > { %v1354_v17 = vpop.eup %1353  ;;  %v659_v18 = vadd.f32 %v1352_v7, %v658_v14  ;;  %v1054_v19 = vmul.f32 -1.442695, %v2344_v16 }
 0x1aa   : > { %v1356_v22 = vpop.eup %1355  ;;  %v649_v24 = vadd.f32 1.0, %v1354_v17 }
 0x1ab   : > { %v663_v26 = vsel %vm662_vm2, %v1352_v7, %v659_v18  ;;  %v671_v27 = vmul.f32 %v1356_v22, %v648_v8  ;;  %1357 = vpow2.f32 %v1054_v19  ;;  %vm676_vm4 = vweird.f32 %v1356_v22 }
 0x1ac   : > { %v668_v28 = vsel %vm665_vm3, %v667_v23, %v663_v26  ;;  %1359 = vrcp.f32 %v649_v24  ;;  %vm677_vm6 = vmor %vm675_vm5, %vm676_vm4  ;;  %v694_v52 = vand.u32 2147483647, %v649_v24  ;;  %v696_v54 = vand.u32 2147483648, %v649_v24 }
 0x1ad   : > { %v775_v29 = vmul.f32 %v668_v28, %v600_v57  ;;  %v672_v30 = vsub.f32 1.0, %v671_v27  ;;  %vm690_vm9 = vweird.f32 %v649_v24  ;;  %v548_v26 = vadd.f32 %v2341_v12, %v547_v10 }
 0x1ae   : > { %v611_v33 = vpop.f32.mrf.mxu1  ;;  %v697_v0 = vor.u32 1.1754944e-38, %v696_v54  ;;  %vm695_vm11 = vcmp.eq.f32.partialorder %v694_v52, 8.507059e+37 }
 0x1af   : > { %v673_v34 = vmul.f32 %v1356_v22, %v672_v30  ;;  %v2351_v35 = vadd.f32 %v2323_v53, %v611_v33  ;;  %v783_v36 = vmul.f32 %v775_v29, %v539_v25 }
 0x1b1   : > { %v1358_v37 = vpop.eup %1357  ;;  %v674_v38 = vadd.f32 %v1356_v22, %v673_v34  ;;  %v1055_v39 = vmul.f32 -1.442695, %v2351_v35  ;;  %827 = vmatmul.f32.vlgmr.msra.gmra.mxu2 %v783_v36 }
 0x1b2   : > { %v1360_v40 = vpop.eup %1359  ;;  %v650_v42 = vadd.f32 1.0, %v1358_v37  ;;  %v550_v37 = vpop.f32.mrf.mxu0 }
 0x1b3   : > { %v678_v43 = vsel %vm677_vm6, %v1356_v22, %v674_v38  ;;  %v686_v44 = vmul.f32 %v1360_v40, %v649_v24  ;;  %1361 = vpow2.f32 %v1055_v39  ;;  %v620_v45 = vpop.f32.mrf.mxu3  ;;  %vm691_vm8 = vweird.f32 %v1360_v40 }
 0x1b4   : > { %v683_v47 = vsel %vm680_vm7, %v682_v41, %v678_v43  ;;  %1363 = vrcp.f32 %v650_v42  ;;  %v2357_v51 = vadd.f32 %v2323_v53, %v620_v45  ;;  %vm692_vm10 = vmor %vm690_vm9, %vm691_vm8  ;;  %v709_v11 = vand.u32 2147483647, %v650_v42 }
 0x1b5   : > { %v776_v49 = vmul.f32 %v683_v47, %v2327_v61  ;;  %v687_v50 = vsub.f32 1.0, %v686_v44  ;;  %v711_v13 = vand.u32 2147483648, %v650_v42  ;;  %vm705_vm13 = vweird.f32 %v650_v42 }
 0x1b6   : > { %v614_v55 = vpop.f32.mrf.mxu1  ;;  %v1058_v57 = vmul.f32 -1.442695, %v2357_v51  ;;  %vm710_vm15 = vcmp.eq.f32.partialorder %v709_v11, 8.507059e+37  ;;  %v551_v44 = vadd.f32 %v2341_v12, %v550_v37 }
 0x1b7   : > { %v688_v56 = vmul.f32 %v1360_v40, %v687_v50  ;;  %v2361_v58 = vadd.f32 %v2323_v53, %v614_v55  ;;  %v784_v59 = vmul.f32 %v776_v49, %v542_v48  ;;  %v712_v25 = vor.u32 1.1754944e-38, %v711_v13 }
 0x1b8   : > { %1365 = vpow2.f32 %v1058_v57 }
 0x1b9   : > { %v1362_v60 = vpop.eup %1361  ;;  %v689_v62 = vadd.f32 %v1360_v40, %v688_v56  ;;  %v1056_v61 = vmul.f32 -1.442695, %v2361_v58  ;;  %830 = vmatmul.f32.gmra.mxu2 %v784_v59 }
 0x1ba   : > { %v1364_v63 = vpop.eup %1363  ;;  %v651_v1 = vadd.f32 1.0, %v1362_v60  ;;  %v553_v56 = vpop.f32.mrf.mxu0 }
 0x1bb   : > { %v693_v5 = vsel %vm692_vm10, %v1360_v40, %v689_v62  ;;  %v701_v6 = vmul.f32 %v1364_v63, %v650_v42  ;;  %1367 = vpow2.f32 %v1056_v61  ;;  %vm706_vm12 = vweird.f32 %v1364_v63 }
 0x1bc   : > { %v698_v7 = vsel %vm695_vm11, %v697_v0, %v693_v5  ;;  %1369 = vrcp.f32 %v651_v1  ;;  %vm707_vm14 = vmor %vm705_vm13, %vm706_vm12  ;;  %v726_v32 = vand.u32 2147483648, %v651_v1  ;;  %v724_v34 = vand.u32 2147483647, %v651_v1 }
 0x1bd   : > { %v777_v8 = vmul.f32 %v698_v7, %v2331_v2  ;;  %v702_v9 = vsub.f32 1.0, %v701_v6  ;;  %vm720_vm1 = vweird.f32 %v651_v1 }
 0x1be   : > { %v617_v14 = vpop.f32.mrf.mxu1  ;;  %v1366_v15 = vpop.eup %1365  ;;  %v727_v41 = vor.u32 1.1754944e-38, %v726_v32  ;;  %vm725_vm3 = vcmp.eq.f32.partialorder %v724_v34, 8.507059e+37 }
 0x1bf   : > { %v703_v17 = vmul.f32 %v1364_v63, %v702_v9  ;;  %v2367_v18 = vadd.f32 %v2323_v53, %v617_v14  ;;  %v785_v19 = vmul.f32 %v777_v8, %v545_v4  ;;  %v2369_v21 = vadd.f32 1.0, %v1366_v15 }
 0x1c1   : > { %v1368_v22 = vpop.eup %1367  ;;  %v704_v23 = vadd.f32 %v1364_v63, %v703_v17  ;;  %v1057_v24 = vmul.f32 -1.442695, %v2367_v18  ;;  %833 = vmatmul.f32.gmra.mxu2 %v785_v19  ;;  %1371 = vrcp.f32 %v2369_v21  ;;  %vm765_vm8 = vweird.f32 %v2369_v21 }
 0x1c2   : > { %v1370_v2 = vpop.eup %1369  ;;  %v652_v53 = vadd.f32 1.0, %v1368_v22  ;;  %v771_v10 = vand.u32 2147483648, %v2369_v21 }
 0x1c3   : > { %v708_v27 = vsel %vm707_vm14, %v1364_v63, %v704_v23  ;;  %v716_v28 = vmul.f32 %v1370_v2, %v651_v1  ;;  %1373 = vpow2.f32 %v1057_v24  ;;  %vm721_vm0 = vweird.f32 %v1370_v2 }
 0x1c4   : > { %v713_v29 = vsel %vm710_vm15, %v712_v25, %v708_v27  ;;  %1375 = vrcp.f32 %v652_v53  ;;  %vm722_vm2 = vmor %vm720_vm1, %vm721_vm0  ;;  %v741_v50 = vand.u32 2147483648, %v652_v53  ;;  %v739_v55 = vand.u32 2147483647, %v652_v53 }
 0x1c5   : > { %v778_v30 = vmul.f32 %v713_v29, %v2344_v16  ;;  %v717_v31 = vsub.f32 1.0, %v716_v28  ;;  %vm735_vm5 = vweird.f32 %v652_v53  ;;  %v554_v63 = vadd.f32 %v2341_v12, %v553_v56 }
 0x1c6   : > { %v742_v62 = vor.u32 1.1754944e-38, %v741_v50  ;;  %vm740_vm7 = vcmp.eq.f32.partialorder %v739_v55, 8.507059e+37  ;;  %v772_v19 = vor.u32 1.1754944e-38, %v771_v10  ;;  %v557_v23 = vadd.f32 %v2341_v12, %v2333_v3  ;;  %v1346_v3 = vld [vmem:[%s489_s22] ss:$0 sm:$0xff]  ;;  %s875_s22 = scalar_lea.hbm %s2655_s20, %s1068_s17 }
 0x1c7   : > { %v718_v33 = vmul.f32 %v1370_v2, %v717_v31  ;;  %v786_v36 = vmul.f32 %v778_v30, %v548_v26  ;;  %v2375_v38 = vpop.eup %1371  ;;  %v560_v27 = vadd.f32 %v2341_v12, %v2347_v20  ;;  %s878_s30 = sshll.u32 %s875_s22, 4  ;;  %s879_s30 = int_to_ptr.hbm [resolvable:$true] %s878_s30 }
 0x1c8   : > { %v761_v48 = vmul.f32 %v2375_v38, %v2369_v21  ;;  %vm766_vm9 = vweird.f32 %v2375_v38  ;;  %s1567_s28 = sshra.s32 %s879_s30, 4  ;;  %s1568_s28 = int_to_ptr.hbm [resolvable:$true] %s1567_s28 }
 0x1c9   : > { %v719_v39 = vadd.f32 %v1370_v2, %v718_v33  ;;  %v1374_v40 = vpop.eup %1373  ;;  %836 = vmatmul.f32.gmra.mxu2 %v786_v36  ;;  %vm2388_vm11 = vmor %vm765_vm8, %vm766_vm9  ;;  %s1569_s0 = scalar_lea.hbm %s1568_s28, 64  ;;  %p1574_p2 = scmp.lt.s32.totalorder %s1568_s28, %s2656_s7 }
 0x1ca   : > { %v1376_v42 = vpop.eup %1375  ;;  %v653_v16 = vadd.f32 1.0, %v1374_v40  ;;  %v762_v57 = vsub.f32 1.0, %v761_v48  ;;  %p1570_p1 = scmp.ne.s32.totalorder %s1568_s28, %s1569_s0  ;;  %p1575_p13 = scmp.lt.s32.totalorder %s1573_s12, %s1569_s0 }
 0x1cb   : > { %v723_v43 = vsel %vm722_vm2, %v1370_v2, %v719_v39  ;;  %v731_v46 = vmul.f32 %v1376_v42, %v652_v53  ;;  %vm736_vm4 = vweird.f32 %v1376_v42 }
 0x1cc   : > { %v728_v45 = vsel %vm725_vm3, %v727_v41, %v723_v43  ;;  %1377 = vrcp.f32 %v653_v16  ;;  %vm737_vm6 = vmor %vm735_vm5, %vm736_vm4  ;;  %v763_v1 = vmul.f32 %v2375_v38, %v762_v57  ;;  %v756_v6 = vand.u32 2147483648, %v653_v16  ;;  %p1571_p10 = pnand %p1570_p1, %p2654_p8  ;;  %p1576_p7 = por %p1575_p13, %p1574_p2 }
 0x1cd   : > { %v779_v47 = vmul.f32 %v728_v45, %v2351_v35  ;;  %v732_v49 = vsub.f32 1.0, %v731_v46  ;;  %v754_v8 = vand.u32 2147483647, %v653_v16  ;;  %vm750_vm12 = vweird.f32 %v653_v16 }
 0x1ce   : > { %v764_v11 = vadd.f32 %v2375_v38, %v763_v1  ;;  %v757_v15 = vor.u32 1.1754944e-38, %v756_v6  ;;  %p1572_p0 = pneg %p1571_p10 }
 0x1cf   : > { %v787_v52 = vmul.f32 %v779_v47, %v551_v44  ;;  %v733_v54 = vmul.f32 %v1376_v42, %v732_v49  ;;  %vm755_vm14 = vcmp.eq.f32.partialorder %v754_v8, 8.507059e+37 }
 0x1d0   : > { %v768_v24 = vsel %vm2388_vm11, %v2375_v38, %v764_v11  ;;  %p1577_p12 = pnand %p1576_p7, %p1572_p0 }
 0x1d1   : > { %v734_v59 = vadd.f32 %v1376_v42, %v733_v54  ;;  %839 = vmatmul.f32.gmra.mxu2 %v787_v52 }
 0x1d2   : > { %v1378_v60 = vpop.eup %1377 }
 0x1d3   : > { %v738_v61 = vsel %vm737_vm6, %v1376_v42, %v734_v59  ;;  %v746_v35 = vmul.f32 %v1378_v60, %v653_v16  ;;  %vm751_vm10 = vweird.f32 %v1378_v60 }
 0x1d4   : > { %v743_v0 = vsel %vm740_vm7, %v742_v62, %v738_v61  ;;  %vm752_vm13 = vmor %vm750_vm12, %vm751_vm10 }
 0x1d5   : > { %v780_v4 = vmul.f32 %v743_v0, %v2361_v58  ;;  %v747_v5 = vsub.f32 1.0, %v746_v35  ;;  %v769_v58 = vand.u32 2147483647, %v2369_v21 }
 0x1d7   : > { %v748_v7 = vmul.f32 %v1378_v60, %v747_v5  ;;  %v788_v9 = vmul.f32 %v780_v4, %v554_v63  ;;  %vm770_vm15 = vcmp.eq.f32.partialorder %v769_v58, 8.507059e+37 }
 0x1d8   : > { %v773_v25 = vsel %vm770_vm15, %v772_v19, %v768_v24 }
 0x1d9   : > { %v749_v14 = vadd.f32 %v1378_v60, %v748_v7  ;;  %842 = vmatmul.f32.gmra.mxu2 %v788_v9  ;;  %v782_v26 = vmul.f32 %v773_v25, %v2357_v51 }
 0x1db   : > { %v753_v17 = vsel %vm752_vm13, %v1378_v60, %v749_v14  ;;  %v790_v28 = vmul.f32 %v782_v26, %v560_v27 }
 0x1dc   : > { %v758_v22 = vsel %vm755_vm14, %v757_v15, %v753_v17 }
 0x1dd   : > { %v781_v21 = vmul.f32 %v758_v22, %v2367_v18 }
 0x1df   : > { %v789_v2 = vmul.f32 %v781_v21, %v557_v23 }
 0x1e1   : > { %845 = vmatmul.f32.gmra.mxu2 %v789_v2 }
 0x1e9   : > { %848 = vmatmul.f32.gmra.mxu2 %v790_v28 }
 0x234   : > { %v828_v53 = vpop.f32.mrf.mxu2 }
 0x235   : > { %v829_v18 = vadd.f32 %v1346_v3, %v828_v53 }
 0x237   : > { %852 = vst [vmem:[%s2410_s19] sm:$0xff] %v829_v18 }
 0x23c   : > { %v831_v12 = vpop.f32.mrf.mxu2 }
 0x23d   : > { %v832_v20 = vadd.f32 %v1346_v3, %v831_v12 }
 0x23f   : > { %853 = vst [vmem:[%s2410_s19 + $0x8] sm:$0xff] %v832_v20 }
 0x244   : > { %v834_v51 = vpop.f32.mrf.mxu2 }
 0x245   : > { %v835_v29 = vadd.f32 %v1346_v3, %v834_v51 }
 0x247   : > { %854 = vst [vmem:[%s2410_s19 + $0x10] sm:$0xff] %v835_v29 }
 0x24c   : > { %v837_v30 = vpop.f32.mrf.mxu2 }
 0x24d   : > { %v838_v31 = vadd.f32 %v1346_v3, %v837_v30 }
 0x24f   : > { %855 = vst [vmem:[%s2410_s19 + $0x18] sm:$0xff] %v838_v31 }
 0x254   : > { %v840_v32 = vpop.f32.mrf.mxu2 }
 0x255   : > { %v841_v33 = vadd.f32 %v1346_v3, %v840_v32 }
 0x257   : > { %856 = vst [vmem:[%s2410_s19 + $0x20] sm:$0xff] %v841_v33 }
 0x25c   : > { %v843_v34 = vpop.f32.mrf.mxu2 }
 0x25d   : > { %v844_v36 = vadd.f32 %v1346_v3, %v843_v34 }
 0x25f   : > { %857 = vst [vmem:[%s2410_s19 + $0x28] sm:$0xff] %v844_v36 }
 0x264   : > { %v846_v37 = vpop.f32.mrf.mxu2 }
 0x265   : > { %v847_v38 = vadd.f32 %v1346_v3, %v846_v37 }
 0x267   : > { %858 = vst [vmem:[%s2410_s19 + $0x30] sm:$0xff] %v847_v38 }
 0x26c   : > { %v849_v39 = vpop.f32.mrf.mxu2 }
 0x26d   : > { %v850_v40 = vadd.f32 %v1346_v3, %v849_v39 }
 0x26f   : > { %859 = vst [vmem:[%s2410_s19 + $0x38] sm:$0xff] %v850_v40 }
 0x270   : > { %1580 = shalt.err (!%p1577_p12)
}
 0x271   : > { %s1783_s9 = smov 128   ;;  %s1784_s25 = smov 8  }
 0x272   : > { %1123 = dma.vmem_to_hbm [thread:$0]  (%p2654_p8), %s877_s18, 1024, %s879_s30, %s861_s23, %s1783_s9, %s1783_s9, %s1784_s25  }
 0x273 PF: > { %s2657_s19 = sld [smem:[#allocation33_spill]]  ;;  %p2660_p5 = scmp.ge.s32.totalorder %s1773_s14, 2 }
 0x274   : > { %s2658_s24 = sld [smem:[#allocation47_spill]] }
 0x279   : > { %s893_s20 = sand.u32 1, %s2657_s19  }
 0x27a   : > { %p2659_p4 = scmp.ne.s32.totalorder %s2658_s24, 0  ;;  %s894_s22 = scalar_lea.sflag [#allocation7], %s893_s20 }
 0x27c   : > { %p1153_p11 = pnand %p2660_p5, %p2659_p4 }
 0x27e   : > { %p1154_p6 = pneg %p1153_p11 }
 0x280   : > { %1688 = dma.done.wait (%p1154_p6), %s894_s22, 1024  }
 0x281   : > { %1690 = vsyncadd (%p1154_p6), %s894_s22, 4294966272  ;;  %s40_s14 = sadd.s32 1, %s1773_s14   ;;  %s2662_s0 = sld [smem:[#allocation34_spill]] }
 0x282   : > { %p2447_p3 = scmp.ge.s32.totalorder %s40_s14, 4   ;;  %s2663_s17 = sld [smem:[#allocation35_spill]] }
 0x283   : > { %s2664_s18 = sld [smem:[#allocation36_spill]]  ;;  %s2670_s30 = smov %s2709_s21 }
 0x284   : > { %s2665_s19 = sld [smem:[#allocation37_spill]]  ;;  %s2673_s12 = smov %s2186_s27 }
 0x285   : > { %s2666_s26 = sld [smem:[#allocation38_spill]]  ;;  %s2675_s20 = smov %s2713_s3 }
 0x286   : > { %s2667_s22 = sld [smem:[#allocation39_spill]]  ;;  %s2678_s23 = smov %s2711_s6 }
 0x287   : > { %s2668_s24 = sld [smem:[#allocation40_spill]] }
 0x288   : > { %s2669_s25 = sld [smem:[#allocation41_spill]] }
 0x289   : > { %s2671_s29 = sld [smem:[#allocation42_spill]] }
 0x28a   : > { %s2672_s2 = sld [smem:[#allocation43_spill]] }
 0x28b   : > { %s2674_s8 = sld [smem:[#allocation54_spill]]  ;;  %s2677_s21 = smov %s2666_s26 }
 0x28c   : > { %s2679_s26 = smov %s2670_s30  ;;  %s2683_s30 = smov %s1757_s10 }
 0x28d   : > { %s2684_s10 = smov %s1761_s11  ;;  %s2685_s11 = smov %s2673_s12 }
 0x28e   : > { %s2686_s12 = smov %s1769_s13  ;;  %39 = sbr.rel (!%p2447_p3) target bundleno = 30 (0x1e), region = 119 }
 0x28f   : > { %s2680_s27 = smov %s2671_s29  ;;  %s2682_s29 = smov %s2707_s16 }
 0x290   : > { %s2681_s28 = smov %s2672_s2 }
 0x291   : > { %s2687_s13 = smov %s2674_s8 }
 0x293   :  { %900 = vsyncpa [#allocation6], 1 }
 0x294   :  { %902 = vsyncpa [#allocation6 + $0x1], 1 }
 0x295   :  { %903 = vsyncpa [#allocation9], 1 }
 0x296   :  { %904 = vsyncpa [#allocation12], 1 }
 0x297   :  { %905 = vsyncpa [#allocation7], 1 }
 0x298   :  { %907 = vsyncpa [#allocation7 + $0x1], 1 }

</bundles_post_ra>
